<compile_context>
chip_gen: v5e
topology: v5e:2x2
jax: 0.10.0
libtpu: 0.0.40
codegen_flags: <defaults>
</compile_context>

<pallas_src>
import jax
import jax.numpy as jnp
from jax.experimental import pallas as pl
from jax.experimental.pallas import tpu as pltpu


_LANE = 128
_VMEM_TILE_BUDGET = 40 * 1024 * 1024   # tile working-set budget (fits v7x 64 MiB/TC)
_VMEM_LIMIT_BYTES = 48 * 1024 * 1024   # raised scoped-VMEM limit (defaults: 16/32 MiB)
_MIN_MACS_FOR_PALLAS = 1 << 22         # ~4M MACs; below this XLA's fused dot wins


def _round_up(v, m):
    return pl.cdiv(v, m) * m


def _pick_divisor_tile(dp, candidates):
    # dp is a multiple of 128, so 128 always divides it.
    for c in candidates:
        if dp % c == 0:
            return c
    return _LANE


def _choose_tiles(B, D, in_bytes, out_bytes, sublane):
    """Pick (tm, tn, tk, padded_D) under the VMEM budget."""
    Dp = _round_up(D, _LANE)
    tn = _pick_divisor_tile(Dp, (256, 128))        # lane-dense output tile
    tk = _pick_divisor_tile(Dp, (512, 256, 128))   # contraction tile
    tm_cap = _round_up(B, sublane)                 # don't over-pad tiny batches
    tm = sublane
    for cand in (512, 256, 128, 64, 32, 16, 8):
        if cand % sublane:
            continue
        t = min(cand, tm_cap)
        usage = (2 * t * tk * in_bytes        # x tiles (double buffered)
                 + 2 * tk * tn * in_bytes     # W tiles (double buffered)
                 + 2 * t * tn * out_bytes     # y tiles (double buffered)
                 + t * tn * 4)                # f32 accumulator scratch
        if usage <= _VMEM_TILE_BUDGET:
            tm = t
            break
    return tm, tn, tk, Dp


def _matmul_kernel(x_ref, w_ref, o_ref, acc_ref):
    """One (tm, tn) output tile; accumulates over the k (contraction) axis."""
    k = pl.program_id(2)

    @pl.when(k == 0)
    def _init():
        acc_ref[...] = jnp.zeros_like(acc_ref)

    acc_ref[...] += jnp.dot(
        x_ref[...], w_ref[...], preferred_element_type=jnp.float32
    )

    @pl.when(k == pl.num_programs(2) - 1)
    def _flush():
        o_ref[...] = acc_ref[...].astype(o_ref.dtype)


def _pallas_matmul(x, W, out_dtype):
    B, D = x.shape
    in_bytes = x.dtype.itemsize
    out_bytes = jnp.dtype(out_dtype).itemsize
    sublane = 16 if in_bytes == 2 else 8

    tm, tn, tk, Dp = _choose_tiles(B, D, in_bytes, out_bytes, sublane)
    Bp = _round_up(B, tm)

    # Zero padding keeps the math exact: padded K entries contribute 0.
    xp = jnp.pad(x, ((0, Bp - B), (0, Dp - D)))
    Wp = jnp.pad(W, ((0, Dp - D), (0, Dp - D)))

    grid = (Bp // tm, Dp // tn, Dp // tk)

    y = pl.pallas_call(
        _matmul_kernel,
        out_shape=jax.ShapeDtypeStruct((Bp, Dp), out_dtype),
        grid_spec=pltpu.PrefetchScalarGridSpec(
            num_scalar_prefetch=0,
            grid=grid,
            in_specs=[
                pl.BlockSpec((tm, tk), lambda i, j, k: (i, k)),   # x tile
                pl.BlockSpec((tk, tn), lambda i, j, k: (k, j)),   # W tile
            ],
            out_specs=pl.BlockSpec((tm, tn), lambda i, j, k: (i, j)),
            scratch_shapes=[pltpu.VMEM((tm, tn), jnp.float32)],
        ),
        compiler_params=pltpu.CompilerParams(
            dimension_semantics=("parallel", "parallel", "arbitrary"),
            vmem_limit_bytes=_VMEM_LIMIT_BYTES,
        ),
        cost_estimate=pl.CostEstimate(
            flops=2 * Bp * Dp * Dp,
            transcendentals=0,
            bytes_accessed=(Bp * Dp + Dp * Dp) * in_bytes + Bp * Dp * out_bytes,
        ),
    )(xp, Wp)

    return y[:B, :D]


def invertible_linear_forward(x, W, *, compute_dtype=None, force_pallas=False):
    """Forward of _InvertibleLinear: returns (x @ W, slogdet(W)[1]).

    compute_dtype: optional MXU input dtype (e.g. jnp.bfloat16) for ~2-3x
      matmul throughput; accumulation stays f32 and y is emitted in x.dtype.
    """
    B, D = x.shape
    assert W.shape == (D, D)
    out_dtype = x.dtype

    # TODO(synk): slogdet requires an LU factorization (sequential pivoting) —
    # no clean Pallas equivalent; computed on the (D, D) parameter in plain JAX.
    logdet = jnp.linalg.slogdet(W.astype(jnp.float32))[1].astype(W.dtype)

    if not force_pallas and B * D * D < _MIN_MACS_FOR_PALLAS:
        # Tiny problem: the Pallas kernel is pure launch/DMA overhead here.
        y = jnp.dot(x, W, preferred_element_type=jnp.float32).astype(out_dtype)
        return y, logdet

    if compute_dtype is not None:
        x_in = x.astype(compute_dtype)
        W_in = W.astype(compute_dtype)
    else:
        x_in, W_in = x, W

    y = _pallas_matmul(x_in, W_in, out_dtype)
    return y, logdet


def make_params(dim, key):
    """Deterministic parameter init mirroring the PyTorch __init__:
    W = QR(randn(dim, dim))[0]  (orthogonal square matrix)."""
    A = jax.random.normal(key, (dim, dim), dtype=jnp.float32)
    Wq, _ = jnp.linalg.qr(A, mode="reduced")
    return Wq


if __name__ == "__main__":
    key = jax.random.PRNGKey(0)
    k_w, k_x = jax.random.split(key)

    dim = 32
    batch = 16

    W = make_params(dim, k_w)
    x = jax.random.normal(k_x, (batch, dim), dtype=jnp.float32)

    # Force the Pallas path even at this tiny demo size (production callers
    # below the FLOP threshold get the XLA fallback automatically).
    y, logdet = invertible_linear_forward(x, W, force_pallas=True)
    y = jax.block_until_ready(y)
    logdet = jax.block_until_ready(logdet)

    y_ref = x @ W
    logdet_ref = jnp.linalg.slogdet(W)[1]
    assert jnp.allclose(y, y_ref, atol=1e-5, rtol=1e-5)
    assert jnp.allclose(logdet, logdet_ref, atol=1e-5, rtol=1e-5)

    # bf16-MXU path (recommended for large D): bf16 inputs, f32 accumulation,
    # output in the caller's f32 dtype. Looser tolerance for the bf16 cast.
    y_bf, _ = invertible_linear_forward(
        x, W, compute_dtype=jnp.bfloat16, force_pallas=True
    )
    y_bf = jax.block_until_ready(y_bf)
    assert jnp.allclose(y_bf, y_ref, atol=5e-2, rtol=5e-2)

    print("KERNEL_OK")
</pallas_src>

<mosaic_0001>
module attributes {stable_mosaic.version = 11 : i64} {
  func.func @_matmul_kernel(%arg0: i32, %arg1: i32, %arg2: i32, %arg3: memref<16x128xf32, #tpu.memory_space<vmem>>, %arg4: memref<128x128xf32, #tpu.memory_space<vmem>>, %arg5: memref<16x128xf32, #tpu.memory_space<vmem>>, %arg6: memref<16x128xf32, #tpu.memory_space<vmem>>) attributes {dimension_semantics = [#tpu.dimension_semantics<parallel>, #tpu.dimension_semantics<parallel>, #tpu.dimension_semantics<arbitrary>], iteration_bounds = array<i64: 1, 1, 1>, scalar_prefetch = 0 : i64, scratch_operands = 1 : i64, tpu.core_type = #tpu.core_type<tc>, window_params = [{transform_indices = @transform_0, window_bounds = array<i64: 16, 128>}, {transform_indices = @transform_1, window_bounds = array<i64: 128, 128>}, {transform_indices = @transform_2, window_bounds = array<i64: 16, 128>}]} {
    %c0_i32 = arith.constant 0 : i32
    %0 = arith.cmpi eq, %arg2, %c0_i32 : i32
    %1 = arith.extui %0 : i1 to i32
    %c0_i32_0 = arith.constant 0 : i32
    %2 = arith.cmpi ne, %1, %c0_i32_0 : i32
    scf.if %2 {
      %cst_10 = arith.constant 0.000000e+00 : f32
      %12 = vector.broadcast %cst_10 : f32 to vector<16x128xf32>
      %c0_11 = arith.constant 0 : index
      %c0_12 = arith.constant 0 : index
      %13 = vector.load %arg6[%c0_11, %c0_12] : memref<16x128xf32, #tpu.memory_space<vmem>>, vector<16x128xf32>
      tpu.vector_store %arg6[%c0_11, %c0_12], %12 {strides = array<i32>} : memref<16x128xf32, #tpu.memory_space<vmem>>, vector<16x128xf32>,
    } else {
    }
    %c0 = arith.constant 0 : index
    %c0_1 = arith.constant 0 : index
    %3 = vector.load %arg6[%c0, %c0_1] : memref<16x128xf32, #tpu.memory_space<vmem>>, vector<16x128xf32>
    %c0_2 = arith.constant 0 : index
    %c0_3 = arith.constant 0 : index
    %4 = vector.load %arg3[%c0_2, %c0_3] : memref<16x128xf32, #tpu.memory_space<vmem>>, vector<16x128xf32>
    %c0_4 = arith.constant 0 : index
    %c0_5 = arith.constant 0 : index
    %5 = vector.load %arg4[%c0_4, %c0_5] : memref<128x128xf32, #tpu.memory_space<vmem>>, vector<128x128xf32>
    %cst = arith.constant dense<0.000000e+00> : vector<16x128xf32>
    %6 = tpu.matmul %4, %5, %cst {dimension_numbers = #tpu.dot_dimension_numbers<[1], [0], [0], [1], [0, 0, 1, 1], [], []>} : vector<16x128xf32>, vector<128x128xf32>, vector<16x128xf32> -> vector<16x128xf32>
    %7 = arith.addf %3, %6 : vector<16x128xf32>
    %c0_6 = arith.constant 0 : index
    %c0_7 = arith.constant 0 : index
    %8 = vector.load %arg6[%c0_6, %c0_7] : memref<16x128xf32, #tpu.memory_space<vmem>>, vector<16x128xf32>
    tpu.vector_store %arg6[%c0_6, %c0_7], %7 {strides = array<i32>} : memref<16x128xf32, #tpu.memory_space<vmem>>, vector<16x128xf32>,
    %c0_i32_8 = arith.constant 0 : i32
    %9 = arith.cmpi eq, %arg2, %c0_i32_8 : i32
    %10 = arith.extui %9 : i1 to i32
    %c0_i32_9 = arith.constant 0 : i32
    %11 = arith.cmpi ne, %10, %c0_i32_9 : i32
    scf.if %11 {
      %c0_10 = arith.constant 0 : index
      %c0_11 = arith.constant 0 : index
      %12 = vector.load %arg6[%c0_10, %c0_11] : memref<16x128xf32, #tpu.memory_space<vmem>>, vector<16x128xf32>
      %c0_12 = arith.constant 0 : index
      %c0_13 = arith.constant 0 : index
      %13 = vector.load %arg5[%c0_12, %c0_13] : memref<16x128xf32, #tpu.memory_space<vmem>>, vector<16x128xf32>
      tpu.vector_store %arg5[%c0_12, %c0_13], %12 {strides = array<i32>} : memref<16x128xf32, #tpu.memory_space<vmem>>, vector<16x128xf32>,
    } else {
    }
    return
  }
  func.func @transform_0(%arg0: i32, %arg1: i32, %arg2: i32) -> (i32, i32) {
    %c0_i32 = arith.constant 0 : i32
    return %arg0, %arg2 : i32, i32
  }
  func.func @transform_1(%arg0: i32, %arg1: i32, %arg2: i32) -> (i32, i32) {
    %c0_i32 = arith.constant 0 : i32
    return %arg2, %arg1 : i32, i32
  }
  func.func @transform_2(%arg0: i32, %arg1: i32, %arg2: i32) -> (i32, i32) {
    %c0_i32 = arith.constant 0 : i32
    return %arg0, %arg1 : i32, i32
  }
}

</mosaic_0001>

<bundles_post_ra>
// kernel: tpu_custom_call.1
= control target key start
LH: loop header
LB: loop body
LE: loop exit
PB: predicated region body
PF: predicated region fallthrough
CT: control target
= control target key end

     0   :  { %7 = vsyncpa [#allocation4], 0  ;;  %s261_s0 = inlined_call_operand.hbm [shape: f32[16,128], index: 0, kind: input, shape index: {}]   ;;  %s262_s1 = inlined_call_operand.hbm [shape: f32[128,128], index: 1, kind: input, shape index: {}]   ;;  %s263_s2 = inlined_call_operand.hbm [shape: f32[16,128], index: 2, kind: output, shape index: {}]  }
   0x1   :  { %8 = vsyncpa [#allocation7], 0 }
   0x2   :  { %9 = vsyncpa [#allocation5], 0  ;;  %s14_s11 = sshll.u32 %s261_s0, 4  ;;  %s223_s12 = smov [#allocation3]   ;;  %s15_s11 = int_to_ptr.hbm [resolvable:$true] %s14_s11 }
   0x3   :  { %s16_s13 = sshll.u32 %s223_s12, 4  ;;  %s27_s16 = sshll.u32 %s262_s1, 4  ;;  %s17_s13 = int_to_ptr.vmem [resolvable:$true] %s16_s13  ;;  %s28_s16 = int_to_ptr.hbm [resolvable:$true] %s27_s16 }
   0x4   :  { %s224_s17 = smov 128   ;;  %s225_s18 = smov 8  }
   0x5   :  { %22 = dma.hbm_to_vmem [thread:$0]  %s15_s11, 256, %s17_s13, [#allocation4], %s224_s17, %s224_s17, %s225_s18  }
   0x6   :  { %s226_s19 = smov [#allocation6]  }
   0x7   :  { %s29_s20 = sshll.u32 %s226_s19, 4  ;;  %s30_s20 = int_to_ptr.vmem [resolvable:$true] %s29_s20 }
   0x8   :  { %35 = dma.hbm_to_vmem [thread:$0]  %s28_s16, 2048, %s30_s20, [#allocation7], %s224_s17, %s224_s17, %s225_s18  }
   0x9   :  { %217 = dma.done.wait [#allocation4], 256  }
   0xa   :  { %218 = vsyncadd [#allocation4], 4294967040 }
   0xb   :  { %219 = dma.done.wait [#allocation7], 2048  }
   0xc   :  { %220 = vsyncadd [#allocation7], 4294965248  ;;  %v69_v0 = vld [vmem:[#allocation6 + $0x78] sm:$0xff]  ;;  %v68_v1 = vld [vmem:[#allocation6 + $0x70] sm:$0xff]  ;;  %s227_s0 = smov [#allocation8]   ;;  %s110_s23 = sshll.u32 %s263_s2, 4  ;;  %s111_s23 = int_to_ptr.hbm [resolvable:$true] %s110_s23 }
   0xd   :  { %70 = vmatpush.msra.mxu0 %v69_v0  ;;  %124 = vmatpush.msra.mxu1 %v69_v0  ;;  %v67_v2 = vld [vmem:[#allocation6 + $0x68] sm:$0xff]  ;;  %v66_v3 = vld [vmem:[#allocation6 + $0x60] sm:$0xff]  ;;  %v65_v4 = vld [vmem:[#allocation6 + $0x58] sm:$0xff]  ;;  %s108_s1 = sshll.u32 %s227_s0, 4  ;;  %s109_s1 = int_to_ptr.vmem [resolvable:$true] %s108_s1 }
   0xe   :  { %v64_v5 = vld [vmem:[#allocation6 + $0x50] sm:$0xff]  ;;  %v63_v6 = vld [vmem:[#allocation6 + $0x48] sm:$0xff]  ;;  %v62_v7 = vld [vmem:[#allocation6 + $0x40] sm:$0xff] }
   0xf   :  { %71 = vmatpush.msra.mxu0 %v68_v1  ;;  %125 = vmatpush.msra.mxu1 %v68_v1  ;;  %v61_v8 = vld [vmem:[#allocation6 + $0x38] sm:$0xff]  ;;  %v60_v9 = vld [vmem:[#allocation6 + $0x30] sm:$0xff]  ;;  %v59_v10 = vld [vmem:[#allocation6 + $0x28] sm:$0xff] }
  0x10   :  { %v58_v11 = vld [vmem:[#allocation6 + $0x20] sm:$0xff]  ;;  %v57_v12 = vld [vmem:[#allocation6 + $0x18] sm:$0xff]  ;;  %v56_v13 = vld [vmem:[#allocation6 + $0x10] sm:$0xff] }
  0x11   :  { %72 = vmatpush.msra.mxu0 %v67_v2  ;;  %126 = vmatpush.msra.mxu1 %v67_v2  ;;  %v55_v14 = vld [vmem:[#allocation6 + $0x8] sm:$0xff]  ;;  %v54_v15 = vld [vmem:[#allocation6] sm:$0xff]  ;;  %v52_v16 = vld [vmem:[#allocation3] sm:$0xff] }
  0x12   :  { %v53_v17 = vld [vmem:[#allocation3 + $0x8] sm:$0xff] }
  0x13   :  { %73 = vmatpush.msra.mxu0 %v66_v3  ;;  %127 = vmatpush.msra.mxu1 %v66_v3 }
  0x15   :  { %74 = vmatpush.msra.mxu0 %v65_v4  ;;  %128 = vmatpush.msra.mxu1 %v65_v4 }
  0x17   :  { %75 = vmatpush.msra.mxu0 %v64_v5  ;;  %129 = vmatpush.msra.mxu1 %v64_v5 }
  0x19   :  { %76 = vmatpush.msra.mxu0 %v63_v6  ;;  %130 = vmatpush.msra.mxu1 %v63_v6 }
  0x1b   :  { %77 = vmatpush.msra.mxu0 %v62_v7  ;;  %131 = vmatpush.msra.mxu1 %v62_v7 }
  0x1d   :  { %78 = vmatpush.msra.mxu0 %v61_v8  ;;  %132 = vmatpush.msra.mxu1 %v61_v8 }
  0x1f   :  { %79 = vmatpush.msra.mxu0 %v60_v9  ;;  %133 = vmatpush.msra.mxu1 %v60_v9 }
  0x21   :  { %80 = vmatpush.msra.mxu0 %v59_v10  ;;  %134 = vmatpush.msra.mxu1 %v59_v10 }
  0x23   :  { %81 = vmatpush.msra.mxu0 %v58_v11  ;;  %135 = vmatpush.msra.mxu1 %v58_v11 }
  0x25   :  { %82 = vmatpush.msra.mxu0 %v57_v12  ;;  %136 = vmatpush.msra.mxu1 %v57_v12 }
  0x27   :  { %83 = vmatpush.msra.mxu0 %v56_v13  ;;  %137 = vmatpush.msra.mxu1 %v56_v13 }
  0x29   :  { %84 = vmatpush.msra.mxu0 %v55_v14  ;;  %138 = vmatpush.msra.mxu1 %v55_v14 }
  0x2b   :  { %85 = vmatpush.msra.mxu0 %v54_v15  ;;  %139 = vmatpush.msra.mxu1 %v54_v15 }
  0x2c   :  { %86 = vmatmul.f32.vlgmr.msra.gmra.mxu0 %v52_v16  ;;  %89 = vmatmul.f32.vlgmr.msra.gmra.mxu1 %v53_v17 }
  0xa9   :  { %v87_v18 = vpop.f32.mrf.mxu0  ;;  %v90_v19 = vpop.f32.mrf.mxu1 }
  0xaa   :  { %102 = vst [vmem:[#allocation8] sm:$0xff] %v87_v18 }
  0xab   :  { %103 = vst [vmem:[#allocation8 + $0x8] sm:$0xff] %v90_v19 }
  0xac   :  { %116 = dma.vmem_to_hbm [thread:$0]  %s109_s1, 256, %s111_s23, [#allocation5], %s224_s17, %s224_s17, %s225_s18  }
  0xad   :  { %221 = dma.done.wait [#allocation5], 256  }
  0xae   :  { %222 = vsyncadd [#allocation5], 4294967040 }
  0xaf   :  { %121 = vsyncpa [#allocation4], 1 }
  0xb0   :  { %122 = vsyncpa [#allocation7], 1 }
  0xb1   :  { %123 = vsyncpa [#allocation5], 1 }

</bundles_post_ra>
